<compile_context>
chip_gen: v6e
topology: v6e:2x2x1
jax: 0.10.0
libtpu: 0.0.40
codegen_flags: <defaults>
</compile_context>

<pallas_src>
import functools

import jax
import jax.numpy as jnp
from jax import lax
from jax.experimental import pallas as pl
from jax.experimental.pallas import tpu as pltpu


def _round_up(x, m):
    return ((x + m - 1) // m) * m


def _elastic_cosface_kernel(flag_ref, emb_ref, w_ref, label_ref,
                            se_ref, sm_ref, out_ref, iwn_ref, *, s, tn, nbj):
    # flag_ref : (nbi*nbj,) int32 in SMEM (scalar prefetch): 1 if this
    #            (row-tile, col-tile) contains at least one label column.
    # emb_ref  : (tb, K)   raw embedding row-tile          (matmul_dtype)
    # w_ref    : (K, tn)   raw weight column-tile          (matmul_dtype)
    # label_ref: (tb, 1)   int32 labels (-1 == ignore)
    # se_ref   : (tb, 1)   s * rsqrt(sum(emb^2, axis=1))   (f32)
    # sm_ref   : (tb, 1)   s * margin (0 where label == -1)
    # out_ref  : (tb, tn)  f32
    # iwn_ref  : (1, tn)   VMEM scratch: cached rsqrt(sum(w^2, axis=0))
    j = pl.program_id(0)   # column-tile index (slow axis -> weight streamed once)
    i = pl.program_id(1)   # row-tile index    (fast axis, sequential)

    # Column inverse norms: computed once per column tile (first row tile) and
    # reused across the whole i sweep -> no extra HBM pass over the weights.
    @pl.when(i == 0)
    def _():
        wf = w_ref[...].astype(jnp.float32)
        w_sq = jnp.sum(wf * wf, axis=0, keepdims=True)            # (1, tn)
        iwn_ref[...] = jnp.where(w_sq > 0.0, lax.rsqrt(w_sq), 0.0)

    logits = jnp.dot(emb_ref[...], w_ref[...],
                     preferred_element_type=jnp.float32)
    # s * clamp(cos, -1, 1) == clamp(s*cos, -s, s) for s > 0.
    cos_s = jnp.clip(logits * se_ref[...] * iwn_ref[...], -s, s)

    flag = flag_ref[i * nbj + j]

    @pl.when(flag == 0)
    def _():
        out_ref[...] = cos_s

    @pl.when(flag != 0)
    def _():
        label = label_ref[...]                                          # (tb, 1)
        col = j * tn + lax.broadcasted_iota(jnp.int32, cos_s.shape, 1)  # (tb, tn)
        hit = col == label      # label == -1 never matches (col >= 0)
        out_ref[...] = cos_s - jnp.where(hit, sm_ref[...], 0.0)


def elastic_cosface_pallas(embeddings, weight, label, margin, *, s=64.0,
                           tb=128, tn=512, matmul_dtype=jnp.float32):
    """Forward of ElasticCosFace (plus=False).

    `margin` is the per-row sampled margin (the torch module draws it from
    Normal(m, std) inside forward; here the RNG lives in the caller).
    For v6e/v7x throughput pass matmul_dtype=jnp.bfloat16 (f32 accumulate);
    default f32 keeps bit-level parity with the reference.
    """
    B, K = embeddings.shape
    K2, N = weight.shape
    assert K == K2

    embeddings = embeddings.astype(jnp.float32)
    weight = weight.astype(jnp.float32)
    label = label.astype(jnp.int32)
    margin = margin.astype(jnp.float32)

    # --- hoisted per-row normalization (tiny B x K pass, f32 precise) -------
    e_sq = jnp.sum(embeddings * embeddings, axis=1, keepdims=True)   # (B, 1)
    se = jnp.where(e_sq > 0.0, s * lax.rsqrt(e_sq), 0.0)             # s folded in
    sm = jnp.where(label[:, None] != -1, s * margin[:, None], 0.0)   # (B, 1)

    # --- tiling / padding ---------------------------------------------------
    tb_eff = min(tb, _round_up(B, 8))
    tn_eff = min(tn, _round_up(N, 128))
    Bp = _round_up(B, tb_eff)
    Np = _round_up(N, tn_eff)
    nbi, nbj = Bp // tb_eff, Np // tn_eff

    emb_p = jnp.pad(embeddings, ((0, Bp - B), (0, 0))).astype(matmul_dtype)
    w_p = jnp.pad(weight, ((0, 0), (0, Np - N))).astype(matmul_dtype)
    lbl_p = jnp.pad(label, (0, Bp - B), constant_values=-1).reshape(Bp, 1)
    se_p = jnp.pad(se, ((0, Bp - B), (0, 0)))
    sm_p = jnp.pad(sm, ((0, Bp - B), (0, 0)))

    # Per-(row-tile, col-tile) "this tile contains a label column" flag table,
    # scalar-prefetched to SMEM so the margin path is skipped on most tiles.
    lbl_blk = jnp.where(lbl_p[:, 0] >= 0, lbl_p[:, 0] // tn_eff, -1)
    lbl_blk = lbl_blk.reshape(nbi, tb_eff)
    flags = (lbl_blk[:, :, None] ==
             jnp.arange(nbj, dtype=jnp.int32)[None, None, :]).any(axis=1)
    flags = flags.astype(jnp.int32).reshape(-1)           # index: i*nbj + j

    kernel = functools.partial(_elastic_cosface_kernel,
                               s=float(s), tn=tn_eff, nbj=nbj)

    grid_spec = pltpu.PrefetchScalarGridSpec(
        num_scalar_prefetch=1,
        grid=(nbj, nbi),   # weight tiles slow-varying -> streamed from HBM once
        in_specs=[
            pl.BlockSpec((tb_eff, K), lambda j, i, f: (i, 0)),   # embeddings
            pl.BlockSpec((K, tn_eff), lambda j, i, f: (0, j)),   # weight
            pl.BlockSpec((tb_eff, 1), lambda j, i, f: (i, 0)),   # labels
            pl.BlockSpec((tb_eff, 1), lambda j, i, f: (i, 0)),   # s * 1/|e|
            pl.BlockSpec((tb_eff, 1), lambda j, i, f: (i, 0)),   # s * margin
        ],
        out_specs=pl.BlockSpec((tb_eff, tn_eff), lambda j, i, f: (i, j)),
        scratch_shapes=[pltpu.VMEM((1, tn_eff), jnp.float32)],   # cached 1/|w|
    )

    out = pl.pallas_call(
        kernel,
        out_shape=jax.ShapeDtypeStruct((Bp, Np), jnp.float32),
        grid_spec=grid_spec,
        compiler_params=pltpu.CompilerParams(
            # column tiles shard across cores; row sweep must run i = 0..nbi-1
            # sequentially so the cached column norms are valid.
            dimension_semantics=("parallel", "arbitrary")),
    )(flags, emb_p, w_p, lbl_p, se_p, sm_p)

    return out[:B, :N]


def elastic_cosface_ref(embeddings, weight, label, margin, *, s=64.0):
    """Pure-JAX reference mirroring the PyTorch ElasticCosFace forward (plus=False)."""
    emb_n = embeddings / jnp.linalg.norm(embeddings, axis=1, keepdims=True)
    w_n = weight / jnp.linalg.norm(weight, axis=0, keepdims=True)
    cos_theta = jnp.clip(emb_n @ w_n, -1.0, 1.0)
    N = weight.shape[1]
    onehot = (jnp.arange(N)[None, :] == label[:, None]) & (label[:, None] != -1)
    cos_theta = cos_theta - jnp.where(onehot, margin[:, None], 0.0)
    return cos_theta * s


if __name__ == "__main__":
    # TODO(synk): plus=True branch (sorting per-row cosines vs. sorted margins
    # before the scatter) is not implemented in-kernel; only plus=False is covered.
    B, in_features, out_features = 16, 32, 256
    s_scale, m_mean, m_std = 64.0, 0.35, 0.0125

    key = jax.random.PRNGKey(0)
    k_emb, k_w, k_lab, k_m = jax.random.split(key, 4)

    embeddings = jax.random.normal(k_emb, (B, in_features), dtype=jnp.float32)
    # nn.init.normal_(self.kernel, std=0.01)
    weight = 0.01 * jax.random.normal(k_w, (in_features, out_features), dtype=jnp.float32)
    label = jax.random.randint(k_lab, (B,), 0, out_features, dtype=jnp.int32)
    label = label.at[3].set(-1)  # exercise the "ignored" (label == -1) path
    # margin ~ Normal(mean=m, std=std) per row (deterministic via PRNGKey)
    margin = m_mean + m_std * jax.random.normal(k_m, (B,), dtype=jnp.float32)

    out = elastic_cosface_pallas(embeddings, weight, label, margin, s=s_scale)
    out = jax.block_until_ready(out)

    ref = elastic_cosface_ref(embeddings, weight, label, margin, s=s_scale)
    assert out.shape == (B, out_features)
    assert jnp.allclose(out, ref, atol=2e-3, rtol=1e-4), "mismatch vs reference"

    print("KERNEL_OK")
</pallas_src>

<mosaic_0001>
module attributes {stable_mosaic.version = 11 : i64} {
  func.func @_elastic_cosface_kernel(%arg0: i32, %arg1: i32, %arg2: memref<1xi32, #tpu.memory_space<smem>>, %arg3: memref<16x32xf32, #tpu.memory_space<vmem>>, %arg4: memref<32x256xf32, #tpu.memory_space<vmem>>, %arg5: memref<16x1xi32, #tpu.memory_space<vmem>>, %arg6: memref<16x1xf32, #tpu.memory_space<vmem>>, %arg7: memref<16x1xf32, #tpu.memory_space<vmem>>, %arg8: memref<16x256xf32, #tpu.memory_space<vmem>>, %arg9: memref<1x256xf32, #tpu.memory_space<vmem>>) attributes {dimension_semantics = [#tpu.dimension_semantics<parallel>, #tpu.dimension_semantics<arbitrary>], iteration_bounds = array<i64: 1, 1>, scalar_prefetch = 1 : i64, scratch_operands = 1 : i64, tpu.core_type = #tpu.core_type<tc>, window_params = [{transform_indices = @transform_0, window_bounds = array<i64: 16, 32>}, {transform_indices = @transform_1, window_bounds = array<i64: 32, 256>}, {transform_indices = @transform_2, window_bounds = array<i64: 16, 1>}, {transform_indices = @transform_3, window_bounds = array<i64: 16, 1>}, {transform_indices = @transform_4, window_bounds = array<i64: 16, 1>}, {transform_indices = @transform_5, window_bounds = array<i64: 16, 256>}]} {
    %c0_i32 = arith.constant 0 : i32
    %0 = arith.cmpi eq, %arg1, %c0_i32 : i32
    %1 = arith.extui %0 : i1 to i32
    %c0_i32_0 = arith.constant 0 : i32
    %2 = arith.cmpi ne, %1, %c0_i32_0 : i32
    scf.if %2 {
      %c0_14 = arith.constant 0 : index
      %c0_15 = arith.constant 0 : index
      %26 = vector.load %arg4[%c0_14, %c0_15] : memref<32x256xf32, #tpu.memory_space<vmem>>, vector<32x256xf32>
      %27 = arith.mulf %26, %26 : vector<32x256xf32>
      %cst_16 = arith.constant dense<0.000000e+00> : vector<256xf32>
      %28 = vector.multi_reduction <add>, %27, %cst_16 [0] : vector<32x256xf32> to vector<256xf32>
      %29 = vector.shape_cast %28 : vector<256xf32> to vector<1x256xf32>
      %cst_17 = arith.constant 0.000000e+00 : f32
      %30 = vector.broadcast %cst_17 : f32 to vector<1x256xf32>
      %31 = arith.cmpf ogt, %29, %30 : vector<1x256xf32>
      %32 = math.rsqrt %29 : vector<1x256xf32>
      %cst_18 = arith.constant 0.000000e+00 : f32
      %33 = vector.broadcast %cst_18 : f32 to vector<1x256xf32>
      %34 = arith.select %31, %32, %33 : vector<1x256xi1>, vector<1x256xf32>
      %c0_19 = arith.constant 0 : index
      %c0_20 = arith.constant 0 : index
      %35 = vector.load %arg9[%c0_19, %c0_20] : memref<1x256xf32, #tpu.memory_space<vmem>>, vector<1x256xf32>
      tpu.vector_store %arg9[%c0_19, %c0_20], %34 {strides = array<i32>} : memref<1x256xf32, #tpu.memory_space<vmem>>, vector<1x256xf32>,
    } else {
    }
    %c0 = arith.constant 0 : index
    %c0_1 = arith.constant 0 : index
    %3 = vector.load %arg3[%c0, %c0_1] : memref<16x32xf32, #tpu.memory_space<vmem>>, vector<16x32xf32>
    %c0_2 = arith.constant 0 : index
    %c0_3 = arith.constant 0 : index
    %4 = vector.load %arg4[%c0_2, %c0_3] : memref<32x256xf32, #tpu.memory_space<vmem>>, vector<32x256xf32>
    %cst = arith.constant dense<0.000000e+00> : vector<16x256xf32>
    %5 = tpu.matmul %3, %4, %cst {dimension_numbers = #tpu.dot_dimension_numbers<[1], [0], [0], [1], [0, 0, 1, 1], [], []>} : vector<16x32xf32>, vector<32x256xf32>, vector<16x256xf32> -> vector<16x256xf32>
    %c0_4 = arith.constant 0 : index
    %c0_5 = arith.constant 0 : index
    %6 = vector.load %arg6[%c0_4, %c0_5] : memref<16x1xf32, #tpu.memory_space<vmem>>, vector<16x1xf32>
    %7 = vector.broadcast %6 : vector<16x1xf32> to vector<16x256xf32>
    %8 = arith.mulf %5, %7 : vector<16x256xf32>
    %c0_6 = arith.constant 0 : index
    %c0_7 = arith.constant 0 : index
    %9 = vector.load %arg9[%c0_6, %c0_7] : memref<1x256xf32, #tpu.memory_space<vmem>>, vector<1x256xf32>
    %10 = vector.broadcast %9 : vector<1x256xf32> to vector<16x256xf32>
    %11 = arith.mulf %8, %10 : vector<16x256xf32>
    %cst_8 = arith.constant -6.400000e+01 : f32
    %cst_9 = arith.constant 6.400000e+01 : f32
    %12 = vector.broadcast %cst_8 : f32 to vector<16x256xf32>
    %13 = arith.maximumf %12, %11 : vector<16x256xf32>
    %14 = vector.broadcast %cst_9 : f32 to vector<16x256xf32>
    %15 = arith.minimumf %14, %13 : vector<16x256xf32>
    %c1_i32 = arith.constant 1 : i32
    %16 = arith.muli %arg1, %c1_i32 : i32
    %17 = arith.addi %16, %arg0 : i32
    %18 = arith.index_cast %17 : i32 to index
    %19 = memref.load %arg2[%18] : memref<1xi32, #tpu.memory_space<smem>>
    %c0_i32_10 = arith.constant 0 : i32
    %20 = arith.cmpi eq, %19, %c0_i32_10 : i32
    %21 = arith.extui %20 : i1 to i32
    %c0_i32_11 = arith.constant 0 : i32
    %22 = arith.cmpi ne, %21, %c0_i32_11 : i32
    scf.if %22 {
      %c0_14 = arith.constant 0 : index
      %c0_15 = arith.constant 0 : index
      %26 = vector.load %arg8[%c0_14, %c0_15] : memref<16x256xf32, #tpu.memory_space<vmem>>, vector<16x256xf32>
      tpu.vector_store %arg8[%c0_14, %c0_15], %15 {strides = array<i32>} : memref<16x256xf32, #tpu.memory_space<vmem>>, vector<16x256xf32>,
    } else {
    }
    %c0_i32_12 = arith.constant 0 : i32
    %23 = arith.cmpi ne, %19, %c0_i32_12 : i32
    %24 = arith.extui %23 : i1 to i32
    %c0_i32_13 = arith.constant 0 : i32
    %25 = arith.cmpi ne, %24, %c0_i32_13 : i32
    scf.if %25 {
      %c0_14 = arith.constant 0 : index
      %c0_15 = arith.constant 0 : index
      %26 = vector.load %arg5[%c0_14, %c0_15] : memref<16x1xi32, #tpu.memory_space<vmem>>, vector<16x1xi32>
      %c256_i32 = arith.constant 256 : i32
      %27 = arith.muli %arg0, %c256_i32 : i32
      %28 = tpu.iota {dimensions = array<i32: 1>} : vector<16x256xi32>
      %29 = vector.broadcast %27 : i32 to vector<16x256xi32>
      %30 = arith.addi %29, %28 : vector<16x256xi32>
      %31 = vector.broadcast %26 : vector<16x1xi32> to vector<16x256xi32>
      %32 = arith.cmpi eq, %30, %31 : vector<16x256xi32>
      %c0_16 = arith.constant 0 : index
      %c0_17 = arith.constant 0 : index
      %33 = vector.load %arg7[%c0_16, %c0_17] : memref<16x1xf32, #tpu.memory_space<vmem>>, vector<16x1xf32>
      %cst_18 = arith.constant 0.000000e+00 : f32
      %34 = vector.shape_cast %33 : vector<16x1xf32> to vector<16x1xf32>
      %35 = vector.broadcast %34 : vector<16x1xf32> to vector<16x256xf32>
      %36 = vector.broadcast %cst_18 : f32 to vector<16x256xf32>
      %37 = arith.select %32, %35, %36 : vector<16x256xi1>, vector<16x256xf32>
      %38 = arith.subf %15, %37 : vector<16x256xf32>
      %c0_19 = arith.constant 0 : index
      %c0_20 = arith.constant 0 : index
      %39 = vector.load %arg8[%c0_19, %c0_20] : memref<16x256xf32, #tpu.memory_space<vmem>>, vector<16x256xf32>
      tpu.vector_store %arg8[%c0_19, %c0_20], %38 {strides = array<i32>} : memref<16x256xf32, #tpu.memory_space<vmem>>, vector<16x256xf32>,
    } else {
    }
    return
  }
  func.func @transform_0(%arg0: i32, %arg1: i32, %arg2: memref<1xi32, #tpu.memory_space<smem>>) -> (i32, i32) {
    %c0_i32 = arith.constant 0 : i32
    %c0_i32_0 = arith.constant 0 : i32
    return %arg1, %c0_i32 : i32, i32
  }
  func.func @transform_1(%arg0: i32, %arg1: i32, %arg2: memref<1xi32, #tpu.memory_space<smem>>) -> (i32, i32) {
    %c0_i32 = arith.constant 0 : i32
    %c0_i32_0 = arith.constant 0 : i32
    return %c0_i32, %arg0 : i32, i32
  }
  func.func @transform_2(%arg0: i32, %arg1: i32, %arg2: memref<1xi32, #tpu.memory_space<smem>>) -> (i32, i32) {
    %c0_i32 = arith.constant 0 : i32
    %c0_i32_0 = arith.constant 0 : i32
    return %arg1, %c0_i32 : i32, i32
  }
  func.func @transform_3(%arg0: i32, %arg1: i32, %arg2: memref<1xi32, #tpu.memory_space<smem>>) -> (i32, i32) {
    %c0_i32 = arith.constant 0 : i32
    %c0_i32_0 = arith.constant 0 : i32
    return %arg1, %c0_i32 : i32, i32
  }
  func.func @transform_4(%arg0: i32, %arg1: i32, %arg2: memref<1xi32, #tpu.memory_space<smem>>) -> (i32, i32) {
    %c0_i32 = arith.constant 0 : i32
    %c0_i32_0 = arith.constant 0 : i32
    return %arg1, %c0_i32 : i32, i32
  }
  func.func @transform_5(%arg0: i32, %arg1: i32, %arg2: memref<1xi32, #tpu.memory_space<smem>>) -> (i32, i32) {
    %c0_i32 = arith.constant 0 : i32
    return %arg1, %arg0 : i32, i32
  }
}

</mosaic_0001>

<bundles_post_ra>
// kernel: tpu_custom_call.1
= control target key start
LH: loop header
LB: loop body
LE: loop exit
PB: predicated region body
PF: predicated region fallthrough
CT: control target
= control target key end

     0   :  { %12 = vsyncpa [#allocation6], 0  ;;  %s472_s0 = inlined_call_operand.<no memory space> [shape: s32[1], index: 0, kind: input, shape index: {}]   ;;  %s473_s1 = inlined_call_operand.vmem [shape: f32[16,32], index: 1, kind: input, shape index: {}]   ;;  %s474_s2 = inlined_call_operand.hbm [shape: f32[32,256], index: 2, kind: input, shape index: {}]   ;;  %s475_s3 = inlined_call_operand.vmem [shape: s32[16,1], index: 3, kind: input, shape index: {}]   ;;  %s476_s4 = inlined_call_operand.vmem [shape: f32[16,1], index: 4, kind: input, shape index: {}]   ;;  %s477_s5 = inlined_call_operand.vmem [shape: f32[16,1], index: 5, kind: input, shape index: {}]   ;;  %s478_s6 = inlined_call_operand.hbm [shape: f32[16,256], index: 6, kind: output, shape index: {}]  }
   0x1   :  { %13 = vsyncpa [#allocation7], 0  ;;  %s387_s21 = smov [#allocation5]  }
   0x2   :  { %s21_s22 = sshll.u32 %s387_s21, 4  ;;  %s22_s22 = int_to_ptr.vmem [resolvable:$true] %s21_s22 }
   0x3   :  { %s351_s23 = scalar_lea.vmem %s22_s22, 1024  ;;  %p356_p1 = scmp.lt.s32.totalorder %s22_s22, %s22_s22 }
   0x4   :  { %p352_p0 = scmp.ne.s32.totalorder %s22_s22, %s351_s23  ;;  %p357_p2 = scmp.lt.s32.totalorder %s351_s23, %s351_s23 }
   0x6   :  { %p358_p3 = por %p357_p2, %p356_p1 }
   0x8   :  { %p359_p4 = pnand %p358_p3, %p352_p0 }
   0xa   :  { %362 = shalt.err (!%p359_p4)
}
   0xb   :  { %s388_s24 = smov 256   ;;  %s389_s25 = smov 16  }
   0xc   :  { %27 = dma.hbm_to_vmem [thread:$0]  %s474_s2, 1024, %s22_s22, [#allocation6], %s388_s24, %s388_s24, %s389_s25  }
   0xd   :  { %383 = dma.done.wait [#allocation6], 1024  }
   0xe   :  { %384 = vsyncadd [#allocation6], 4294966272  ;;  %v390_v0 = vmov 0.0   ;;  %v391_v1 = vmov 0   ;;  %v113_v2 = vld [vmem:[#allocation5 + $0x38] sm:$0xff]  ;;  %v112_v3 = vld [vmem:[#allocation5 + $0x30] sm:$0xff]  ;;  %v87_v42 = vlaneseq }
   0xf   :  { %185 = vmatprep.mubr.f32.mxu0 %v390_v0  ;;  %191 = vmatprep.mubr.f32.mxu1 %v390_v0  ;;  %v111_v4 = vld [vmem:[#allocation5 + $0x28] sm:$0xff]  ;;  %v110_v5 = vld [vmem:[#allocation5 + $0x20] sm:$0xff]  ;;  %v109_v6 = vld [vmem:[#allocation5 + $0x18] sm:$0xff]  ;;  %vm114_vm0 = vcmask 261120   ;;  %v55_v20 = vmul.f32 %v112_v3, %v112_v3  ;;  %v56_v22 = vmul.f32 %v113_v2, %v113_v2  ;;  %v392_v40 = vmov 1966171168  }
  0x10   :  { %336 = vset.pattern.permute.xlu0 %v391_v1  ;;  %145 = vmatprep.subr.mxu0 %v113_v2  ;;  %v108_v7 = vld [vmem:[#allocation5 + $0x10] sm:$0xff]  ;;  %v107_v8 = vld [vmem:[#allocation5 + $0x8] sm:$0xff]  ;;  %v106_v9 = vld [vmem:[#allocation5] sm:$0xff]  ;;  %v52_v16 = vmul.f32 %v109_v6, %v109_v6  ;;  %v53_v17 = vmul.f32 %v110_v5, %v110_v5  ;;  %v54_v18 = vmul.f32 %v111_v4, %v111_v4  ;;  %v85_v41 = vunpack.c.l.s4 %v392_v40  ;;  %p318_p5 = scmp.ne.s32.totalorder %s472_s0, 0 }
  0x11   :  { %320 = vmatprep.subr.mxu1 %v113_v2  ;;  %146 = vmatpush1.msra.mxu0 %v112_v3  ;;  %v104_v10 = vld [vmem:[%s473_s1] sm:$0xff]  ;;  %v105_v11 = vld [vmem:[%s473_s1 + $0x8] sm:$0xff]  ;;  %v49_v13 = vmul.f32 %v106_v9, %v106_v9  ;;  %v50_v14 = vmul.f32 %v107_v8, %v107_v8  ;;  %v51_v15 = vmul.f32 %v108_v7, %v108_v7  ;;  %v88_v44 = vshrl.u32 %v87_v42, 7 }
  0x12   :  { %324 = vmatpush1.msra.mxu1 %v112_v3  ;;  %147 = vmatprep.subr.mxu0 %v111_v4  ;;  %v198_v12 = vld [vmem:[%s476_s4] sm:$0xff]  ;;  %v199_v19 = vld [vmem:[%s476_s4 + $0x8] sm:$0xff]  ;;  %v86_v43 = vunpack.c.0.s8 %v85_v41  ;;  %vm101_vm3 = vcmp.lt.s32.totalorder %v87_v42, 256 }
  0x13   :  { %321 = vmatprep.subr.mxu1 %v111_v4  ;;  %148 = vmatpush1.msra.mxu0 %v110_v5  ;;  %v57_v21 = vadd.f32 %v51_v15, %v49_v13  ;;  %v66_v23 = vadd.f32 %v52_v16, %v50_v14  ;;  %v218_v54 = vsub.s32 0, %v88_v44  ;;  %v222_v56 = vsub.s32 1, %v88_v44 }
  0x14   :  { %325 = vmatpush1.msra.mxu1 %v110_v5  ;;  %149 = vmatprep.subr.mxu0 %v109_v6  ;;  %v89_v48 = vsub.s32 %v86_v43, %v88_v44 }
  0x15   :  { %322 = vmatprep.subr.mxu1 %v109_v6  ;;  %150 = vmatpush1.msra.mxu0 %v108_v7  ;;  %v58_v24 = vadd.f32 %v57_v21, %v53_v17  ;;  %v67_v25 = vadd.f32 %v66_v23, %v54_v18 }
  0x16   :  { %326 = vmatpush1.msra.mxu1 %v108_v7  ;;  %151 = vmatprep.subr.mxu0 %v107_v8 }
  0x17   :  { %323 = vmatprep.subr.mxu1 %v107_v8  ;;  %152 = vmatpush1.msra.mxu0 %v106_v9  ;;  %v59_v26 = vadd.f32 %v58_v24, %v55_v20  ;;  %v68_v27 = vadd.f32 %v67_v25, %v56_v22 }
  0x18   :  { %327 = vmatpush1.msra.mxu1 %v106_v9  ;;  %312 = vmatmul.mubr.msk.f32.vlgmr.msra.gmra.mxu0 %vm114_vm0, %v104_v10 }
  0x19   :  { %313 = vmatmul.mubr.msk.f32.vlgmr.msra.gmra.mxu1 %vm114_vm0, %v105_v11  ;;  %202 = vperm.xlu0 %336, %v198_v12   ;;  %v60_v28 = vrot.slane %v59_v26, 4  ;;  %v69_v29 = vrot.slane %v68_v27, 4 }
  0x1b   :  { %v61_v30 = vadd.f32 %v60_v28, %v59_v26  ;;  %v70_v31 = vadd.f32 %v69_v29, %v68_v27 }
  0x1d   :  { %207 = vperm.xlu0 %336, %v199_v19   ;;  %v62_v32 = vrot.slane %v61_v30, 2  ;;  %v71_v33 = vrot.slane %v70_v31, 2 }
  0x1f   :  { %v63_v34 = vadd.f32 %v62_v32, %v61_v30  ;;  %v72_v35 = vadd.f32 %v71_v33, %v70_v31 }
  0x21   :  { %v64_v36 = vrot.slane %v63_v34, 1  ;;  %v73_v37 = vrot.slane %v72_v35, 1 }
  0x23   :  { %v65_v38 = vadd.f32 %v64_v36, %v63_v34  ;;  %v74_v39 = vadd.f32 %v73_v37, %v72_v35 }
  0x25   :  { %337 = vrsqrt.f32 %v65_v38  ;;  %vm75_vm1 = vcmp.gt.f32.partialorder %v65_v38, 0.0  ;;  %vm76_vm2 = vcmp.gt.f32.partialorder %v74_v39, 0.0 }
  0x26   :  { %339 = vrsqrt.f32 %v74_v39 }
  0x32   :  { %v338_v45 = vpop.eup %337 }
  0x33   :  { %v340_v46 = vpop.eup %339  ;;  %v79_v47 = vsel %vm75_vm1, %v338_v45, 0.0 }
  0x34   :  { %v80_v49 = vsel %vm76_vm2, %v340_v46, 0.0 }
  0x35   :  { %v83_v50 = vcombine.low %v79_v47, %v80_v49 }
  0x37   :  { %v90_v51 = vrot.slane %v83_v50, %v89_v48 }
  0x39   :  { %v97_v52 = vrot.slane %v90_v51, %v89_v48 }
  0x3b   :  { %103 = vst.msk [vmem:[#allocation2] sm:$0x3] %vm101_vm3, %v97_v52 }
  0x42   :  { %v214_v55 = vld [vmem:[#allocation2] sm:$0x3] }
  0x43   :  { %v219_v58 = vrot.slane %v214_v55, %v218_v54  ;;  %v223_v63 = vrot.slane %v214_v55, %v222_v56 }
  0x94   :  { %v203_v53 = vpop.permute.xlu0 %202 }
  0x98   :  { %v208_v57 = vpop.permute.xlu0 %207 }
  0xd8   :  { %v187_v59 = vpop.f32.mrf.mxu0 }
  0xd9   :  { %v193_v60 = vpop.f32.mrf.mxu1  ;;  %v210_v61 = vmul.f32 %v203_v53, %v187_v59 }
  0xda   :  { %v212_v62 = vmul.f32 %v208_v57, %v193_v60  ;;  %v189_v0 = vpop.f32.mrf.mxu0 }
  0xdb   :  { %v195_v1 = vpop.f32.mrf.mxu1  ;;  %v226_v2 = vmul.f32 %v219_v58, %v210_v61  ;;  %v211_v4 = vmul.f32 %v203_v53, %v189_v0 }
  0xdc   :  { %v228_v3 = vmul.f32 %v219_v58, %v212_v62  ;;  %v213_v5 = vmul.f32 %v208_v57, %v195_v1  ;;  %243 = sbr.rel (%p318_p5) target bundleno = 227 (0xe3), region = 33 }
  0xdd   :  { %v314_v6 = vclamps-f32 %v226_v2, 64.0  ;;  %v227_v8 = vmul.f32 %v223_v63, %v211_v4 }
  0xde   :  { %v316_v7 = vclamps-f32 %v228_v3, 64.0  ;;  %v229_v9 = vmul.f32 %v223_v63, %v213_v5 }
  0xdf   :  { %v315_v10 = vclamps-f32 %v227_v8, 64.0 }
  0xe0   :  { %v317_v11 = vclamps-f32 %v229_v9, 64.0 }
  0xe1   :  { %244 = vst [vmem:[#allocation8] sm:$0xff] %v314_v6  ;;  %245 = vst [vmem:[#allocation8 + $0x8] sm:$0xff] %v315_v10 }
  0xe2   :  { %246 = vst [vmem:[#allocation8 + $0x10] sm:$0xff] %v316_v7  ;;  %247 = vst [vmem:[#allocation8 + $0x18] sm:$0xff] %v317_v11 }
  0xe3 PF:  { %p319_p6 = scmp.eq.s32.totalorder %s472_s0, 0 }
  0xe5   :  { %251 = sbr.rel (%p319_p6) target bundleno = 369 (0x171), region = 37 }
  0xea   :  { %v271_v12 = vld [vmem:[%s477_s5] sm:$0xff]  ;;  %v393_v14 = vmov 0   ;;  %v272_v15 = vld [vmem:[%s477_s5 + $0x8] sm:$0xff]  ;;  %v256_v17 = vand.u32 127, %v87_v42 }
  0xeb   :  { %v252_v13 = vld [vmem:[%s475_s3] sm:$0xff]  ;;  %342 = vset.pattern.permute.xlu1 %v393_v14  ;;  %341 = vset.pattern.permute.xlu0 %v393_v14  ;;  %v253_v16 = vld [vmem:[%s475_s3 + $0x8] sm:$0xff] }
  0xec   :  { %275 = vperm.xlu1 %342, %v271_v12   ;;  %262 = vperm.xlu0 %341, %v252_v13   ;;  %v257_v18 = vadd.s32 128, %v256_v17 }
  0xf0   :  { %280 = vperm.xlu1 %342, %v272_v15   ;;  %265 = vperm.xlu0 %341, %v253_v16  }
 0x167   :  { %v276_v19 = vpop.permute.xlu1 %275  ;;  %v263_v20 = vpop.permute.xlu0 %262 }
 0x168   :  { %vm267_vm4 = vcmp.eq.s32.totalorder %v256_v17, %v263_v20  ;;  %vm268_vm5 = vcmp.eq.s32.totalorder %v257_v18, %v263_v20 }
 0x169   :  { %v283_v21 = vsel %vm267_vm4, %v276_v19, 0.0  ;;  %v284_v22 = vsel %vm268_vm5, %v276_v19, 0.0 }
 0x16a   :  { %v287_v23 = vsub.f32 %v314_v6, %v283_v21  ;;  %v288_v24 = vsub.f32 %v315_v10, %v284_v22 }
 0x16b   :  { %v281_v25 = vpop.permute.xlu1 %280  ;;  %v266_v26 = vpop.permute.xlu0 %265 }
 0x16c   :  { %291 = vst [vmem:[#allocation8] sm:$0xff] %v287_v23  ;;  %292 = vst [vmem:[#allocation8 + $0x8] sm:$0xff] %v288_v24  ;;  %vm269_vm6 = vcmp.eq.s32.totalorder %v256_v17, %v266_v26  ;;  %vm270_vm7 = vcmp.eq.s32.totalorder %v257_v18, %v266_v26 }
 0x16d   :  { %v285_v27 = vsel %vm269_vm6, %v281_v25, 0.0  ;;  %v286_v28 = vsel %vm270_vm7, %v281_v25, 0.0 }
 0x16e   :  { %v289_v29 = vsub.f32 %v316_v7, %v285_v27  ;;  %v290_v30 = vsub.f32 %v317_v11, %v286_v28 }
 0x170   :  { %293 = vst [vmem:[#allocation8 + $0x10] sm:$0xff] %v289_v29  ;;  %294 = vst [vmem:[#allocation8 + $0x18] sm:$0xff] %v290_v30 }
 0x171 PF:  { %s394_s3 = smov [#allocation8]  }
 0x172   :  { %s300_s5 = sshll.u32 %s394_s3, 4  ;;  %s301_s5 = int_to_ptr.vmem [resolvable:$true] %s300_s5 }
 0x173   :  { %s363_s20 = scalar_lea.vmem %s301_s5, 512  ;;  %p368_p8 = scmp.lt.s32.totalorder %s301_s5, %s301_s5 }
 0x174   :  { %p364_p7 = scmp.ne.s32.totalorder %s301_s5, %s363_s20  ;;  %p369_p9 = scmp.lt.s32.totalorder %s363_s20, %s363_s20 }
 0x176   :  { %p370_p10 = por %p369_p9, %p368_p8 }
 0x178   :  { %p371_p11 = pnand %p370_p10, %p364_p7 }
 0x17a   :  { %374 = shalt.err (!%p371_p11)
}
 0x17b   :  { %306 = dma.vmem_to_hbm [thread:$0]  %s301_s5, 512, %s478_s6, [#allocation7], %s388_s24, %s388_s24, %s389_s25  }
 0x17c   :  { %385 = dma.done.wait [#allocation7], 512  }
 0x17d   :  { %386 = vsyncadd [#allocation7], 4294966784 }
 0x17e   :  { %310 = vsyncpa [#allocation6], 1 }
 0x17f   :  { %311 = vsyncpa [#allocation7], 1 }

</bundles_post_ra>
